<compile_context>
chip_gen: v7x
topology: tpu7x:2x2x1
jax: 0.10.0
libtpu: 0.0.40
codegen_flags: <defaults>
</compile_context>

<pallas_src>
import math
import functools

import jax
import jax.numpy as jnp
from jax.experimental import pallas as pl
from jax.experimental.pallas import tpu as pltpu


def _pe_kernel(base_ref, t1_ref, t2_ref, o_ref):
    # base_ref: (1, 2, C)     sin/cos of this block's base angle A = block_start_pos * freq
    # t1_ref:   (rows, C)     resident:  even col -> cos(B), odd col -> -sin(B)
    # t2_ref:   (rows, C)     resident:  even col -> sin(B), odd col ->  cos(B)
    # o_ref:    (rows, C)     flat PE tile; element (r, j) is position start + r*k + j//d_model
    base = base_ref[0]            # (2, C)
    sin_a = base[0:1, :]          # (1, C)
    cos_a = base[1:2, :]          # (1, C)
    o_ref[...] = sin_a * t1_ref[...] + cos_a * t2_ref[...]


def _pack_factor(d_model):
    # Pack k consecutive positions into one flat row so the lane dim C = k*d_model is a
    # multiple of 128 (lane-dense stores). Fall back to no packing if that blows up.
    if d_model % 128 == 0:
        return 1
    k = math.lcm(d_model, 128) // d_model
    return k if k <= 128 else 1


_TARGET_BLOCK_BYTES = 2 * 1024 * 1024  # per output block; x2 buffers + T1/T2 stays ~12 MiB VMEM


@functools.lru_cache(maxsize=None)
def _pe_table(seq_len, d_model):
    """Build pe[:, :seq_len] of shape (1, seq_len, d_model), cached like the torch buffer."""
    k = _pack_factor(d_model)
    C = k * d_model
    flat_rows = pl.cdiv(seq_len, k)
    out_rows = pl.cdiv(flat_rows, 8) * 8           # sublane-align only (trimmed after reshape)

    row_bytes = C * 4
    cap_rows = max(8, (_TARGET_BLOCK_BYTES // row_bytes) // 8 * 8)
    if out_rows <= cap_rows:
        block_rows = out_rows                       # single block
    else:
        # At least 2 blocks so the "parallel" axis shards across v7x's two TensorCores.
        half = pl.cdiv(pl.cdiv(out_rows, 2), 8) * 8
        block_rows = min(cap_rows, half)
    num_blocks = pl.cdiv(out_rows, block_rows)      # last block may overhang -> masked

    # Per-flat-column constants (exp hoisted out of the kernel entirely).
    j = jnp.arange(C, dtype=jnp.int32)
    col = j % d_model
    pos_off = (j // d_model).astype(jnp.float32)    # position offset within a flat row
    freq = jnp.exp((2.0 * (col // 2).astype(jnp.float32)) * (-math.log(10000.0) / d_model))
    is_even = ((col % 2) == 0)[None, :]

    # Within-block angle tables (block_rows, C): B = (r*k + pos_off) * freq.
    r = jnp.arange(block_rows, dtype=jnp.float32)[:, None]
    B = (r * jnp.float32(k) + pos_off[None, :]) * freq[None, :]
    sinB, cosB = jnp.sin(B), jnp.cos(B)
    t1 = jnp.where(is_even, cosB, -sinB)            # coefficient of sin(A)
    t2 = jnp.where(is_even, sinB, cosB)             # coefficient of cos(A)

    # Per-block base angles A = block_start_position * freq  -> (num_blocks, 2, C).
    starts = (jnp.arange(num_blocks, dtype=jnp.float32) * jnp.float32(block_rows * k))[:, None]
    A = starts * freq[None, :]
    base = jnp.stack([jnp.sin(A), jnp.cos(A)], axis=1)

    flat = pl.pallas_call(
        _pe_kernel,
        out_shape=jax.ShapeDtypeStruct((out_rows, C), jnp.float32),
        grid=(num_blocks,),
        in_specs=[
            pl.BlockSpec((1, 2, C), lambda i: (i, 0, 0)),          # per-block sinA/cosA row
            pl.BlockSpec((block_rows, C), lambda i: (0, 0)),       # resident T1
            pl.BlockSpec((block_rows, C), lambda i: (0, 0)),       # resident T2
        ],
        out_specs=pl.BlockSpec((block_rows, C), lambda i: (i, 0)),
        compiler_params=pltpu.CompilerParams(
            dimension_semantics=("parallel",),
            vmem_limit_bytes=32 * 1024 * 1024,      # ~12 MiB needed; safe on v5e/v6e/v7x
        ),
    )(base, t1, t2)

    # Row-major reshape back to (positions, d_model) is free; trim the <=(8k-1) pad positions.
    pe = flat.reshape(out_rows * k, d_model)[:seq_len]
    return pe[None, :, :]


def positional_encoding_forward(x):
    """Equivalent of PositionalEncoding(d_model).forward(x): returns pe[:, :seq_len]."""
    return _pe_table(int(x.shape[1]), int(x.shape[2]))


def _reference_pe(seq_len, d_model):
    # Pure-JAX reference mirroring the PyTorch __init__ construction.
    position = jnp.arange(seq_len, dtype=jnp.float32)[:, None]
    div_term = jnp.exp(
        jnp.arange(0, d_model, 2, dtype=jnp.float32) * (-math.log(10000.0) / d_model)
    )
    pe = jnp.zeros((seq_len, d_model), jnp.float32)
    pe = pe.at[:, 0::2].set(jnp.sin(position * div_term))
    pe = pe.at[:, 1::2].set(jnp.cos(position * div_term))
    return pe[None]


if __name__ == "__main__":
    key = jax.random.PRNGKey(0)
    batch, seq_len, d_model = 2, 8, 32
    x = jax.random.normal(key, (batch, seq_len, d_model), dtype=jnp.float32)

    out = positional_encoding_forward(x)
    out = jax.block_until_ready(out)

    ref = _reference_pe(seq_len, d_model)
    assert out.shape == (1, seq_len, d_model), out.shape
    assert jnp.allclose(out, ref, atol=1e-5, rtol=1e-5), "mismatch vs reference"

    print("KERNEL_OK")
</pallas_src>

<mosaic_0001>
module attributes {stable_mosaic.version = 11 : i64} {
  func.func @_pe_kernel(%arg0: i32, %arg1: memref<1x2x128xf32, #tpu.memory_space<vmem>>, %arg2: memref<8x128xf32, #tpu.memory_space<vmem>>, %arg3: memref<8x128xf32, #tpu.memory_space<vmem>>, %arg4: memref<8x128xf32, #tpu.memory_space<vmem>>) attributes {dimension_semantics = [#tpu.dimension_semantics<parallel>], iteration_bounds = array<i64: 1>, scalar_prefetch = 0 : i64, scratch_operands = 0 : i64, tpu.core_type = #tpu.core_type<tc>, window_params = [{transform_indices = @transform_0, window_bounds = array<i64: 1, 2, 128>}, {pipeline_mode = #tpu.pipeline_mode<synchronous>, transform_indices = @transform_1, window_bounds = array<i64: 8, 128>}, {pipeline_mode = #tpu.pipeline_mode<synchronous>, transform_indices = @transform_2, window_bounds = array<i64: 8, 128>}, {transform_indices = @transform_3, window_bounds = array<i64: 8, 128>}]} {
    %c0 = arith.constant 0 : index
    %c0_0 = arith.constant 0 : index
    %c0_1 = arith.constant 0 : index
    %0 = vector.load %arg1[%c0, %c0_0, %c0_1] : memref<1x2x128xf32, #tpu.memory_space<vmem>>, vector<1x2x128xf32>
    %1 = vector.shape_cast %0 : vector<1x2x128xf32> to vector<2x128xf32>
    %2 = vector.extract_strided_slice %1 {offsets = [0, 0], sizes = [1, 128], strides = [1, 1]} : vector<2x128xf32> to vector<1x128xf32>
    %3 = vector.extract_strided_slice %1 {offsets = [1, 0], sizes = [1, 128], strides = [1, 1]} : vector<2x128xf32> to vector<1x128xf32>
    %c0_2 = arith.constant 0 : index
    %c0_3 = arith.constant 0 : index
    %4 = vector.load %arg2[%c0_2, %c0_3] : memref<8x128xf32, #tpu.memory_space<vmem>>, vector<8x128xf32>
    %5 = vector.broadcast %2 : vector<1x128xf32> to vector<8x128xf32>
    %6 = arith.mulf %5, %4 : vector<8x128xf32>
    %c0_4 = arith.constant 0 : index
    %c0_5 = arith.constant 0 : index
    %7 = vector.load %arg3[%c0_4, %c0_5] : memref<8x128xf32, #tpu.memory_space<vmem>>, vector<8x128xf32>
    %8 = vector.broadcast %3 : vector<1x128xf32> to vector<8x128xf32>
    %9 = arith.mulf %8, %7 : vector<8x128xf32>
    %10 = arith.addf %6, %9 : vector<8x128xf32>
    %c0_6 = arith.constant 0 : index
    %c0_7 = arith.constant 0 : index
    %11 = vector.load %arg4[%c0_6, %c0_7] : memref<8x128xf32, #tpu.memory_space<vmem>>, vector<8x128xf32>
    tpu.vector_store %arg4[%c0_6, %c0_7], %10 {strides = array<i32>} : memref<8x128xf32, #tpu.memory_space<vmem>>, vector<8x128xf32>,
    return
  }
  func.func @transform_0(%arg0: i32) -> (i32, i32, i32) {
    %c0_i32 = arith.constant 0 : i32
    %c0_i32_0 = arith.constant 0 : i32
    %c0_i32_1 = arith.constant 0 : i32
    return %arg0, %c0_i32, %c0_i32_0 : i32, i32, i32
  }
  func.func @transform_1(%arg0: i32) -> (i32, i32) {
    %c0_i32 = arith.constant 0 : i32
    %c0_i32_0 = arith.constant 0 : i32
    %c0_i32_1 = arith.constant 0 : i32
    return %c0_i32, %c0_i32_0 : i32, i32
  }
  func.func @transform_2(%arg0: i32) -> (i32, i32) {
    %c0_i32 = arith.constant 0 : i32
    %c0_i32_0 = arith.constant 0 : i32
    %c0_i32_1 = arith.constant 0 : i32
    return %c0_i32, %c0_i32_0 : i32, i32
  }
  func.func @transform_3(%arg0: i32) -> (i32, i32) {
    %c0_i32 = arith.constant 0 : i32
    %c0_i32_0 = arith.constant 0 : i32
    return %arg0, %c0_i32 : i32, i32
  }
}

</mosaic_0001>

<bundles_post_ra>
// kernel: tpu_custom_call.1
= control target key start
LH: loop header
LB: loop body
LE: loop exit
PB: predicated region body
PF: predicated region fallthrough
CT: control target
= control target key end

     0   :  { %8 = vsyncpa [#allocation3], 0  ;;  %s251_s0 = inlined_call_operand.hbm [shape: f32[1,2,128], index: 0, kind: input, shape index: {}]   ;;  %s252_s1 = inlined_call_operand.hbm [shape: f32[8,128], index: 1, kind: input, shape index: {}]   ;;  %s253_s2 = inlined_call_operand.hbm [shape: f32[8,128], index: 2, kind: input, shape index: {}]   ;;  %s254_s3 = inlined_call_operand.hbm [shape: f32[8,128], index: 3, kind: output, shape index: {}]  }
   0x1   :  { %9 = vsyncpa [#allocation6], 0 }
   0x2   :  { %10 = vsyncpa [#allocation4], 0  ;;  %s179_s12 = smov [#allocation5]   ;;  %s180_s14 = smov [#allocation2]  }
   0x3   :  { %s27_s13 = sshll.u32 %s179_s12, 4  ;;  %s17_s15 = sshll.u32 %s180_s14, 4  ;;  %s28_s13 = int_to_ptr.vmem [resolvable:$true] %s27_s13  ;;  %s18_s15 = int_to_ptr.vmem [resolvable:$true] %s17_s15 }
   0x4   :  { %s85_s18 = scalar_lea.hbm %s252_s1, 128 }
   0x5   :  { %p86_p0 = scmp.ne.s32.totalorder %s252_s1, %s85_s18  ;;  %p89_p1 = scmp.lt.u32.totalorder %s85_s18, %s252_s1 }
   0x7   :  { %p91_p2 = pnand %p89_p1, %p86_p0 }
   0x9   :  { %94 = shalt.err (!%p91_p2)
}
   0xa   :  { %s95_s23 = scalar_lea.vmem %s28_s13, 128  ;;  %p100_p4 = scmp.lt.s32.totalorder %s28_s13, %s28_s13 }
   0xb   :  { %p96_p3 = scmp.ne.s32.totalorder %s28_s13, %s95_s23  ;;  %p101_p5 = scmp.lt.s32.totalorder %s95_s23, %s95_s23 }
   0xd   :  { %p102_p6 = por %p101_p5, %p100_p4 }
   0xf   :  { %p103_p7 = pnand %p102_p6, %p96_p3 }
  0x11   :  { %106 = shalt.err (!%p103_p7)
}
  0x12   :  { %30 = dma.hbm_to_vmem [thread:$0]  %s252_s1, 128, %s28_s13, [#allocation6]  }
  0x13   :  { %s107_s28 = scalar_lea.hbm %s251_s0, 32 }
  0x14   :  { %p108_p8 = scmp.ne.s32.totalorder %s251_s0, %s107_s28  ;;  %p111_p9 = scmp.lt.u32.totalorder %s107_s28, %s251_s0 }
  0x16   :  { %p113_p10 = pnand %p111_p9, %p108_p8 }
  0x18   :  { %116 = shalt.err (!%p113_p10)
}
  0x19   :  { %s117_s6 = scalar_lea.vmem %s18_s15, 32  ;;  %p122_p12 = scmp.lt.s32.totalorder %s18_s15, %s18_s15 }
  0x1a   :  { %p118_p11 = scmp.ne.s32.totalorder %s18_s15, %s117_s6  ;;  %p123_p13 = scmp.lt.s32.totalorder %s117_s6, %s117_s6 }
  0x1c   :  { %p124_p0 = por %p123_p13, %p122_p12 }
  0x1e   :  { %p125_p1 = pnand %p124_p0, %p118_p11 }
  0x20   :  { %128 = shalt.err (!%p125_p1)
}
  0x21   :  { %20 = dma.hbm_to_vmem [thread:$0]  %s251_s0, 32, %s18_s15, [#allocation3]  }
  0x22   :  { %s181_s8 = smov [#allocation7]   ;;  %s129_s12 = scalar_lea.hbm %s253_s2, 128 }
  0x23   :  { %s37_s9 = sshll.u32 %s181_s8, 4  ;;  %p130_p2 = scmp.ne.s32.totalorder %s253_s2, %s129_s12  ;;  %s38_s9 = int_to_ptr.vmem [resolvable:$true] %s37_s9 }
  0x24   :  { %p133_p3 = scmp.lt.u32.totalorder %s129_s12, %s253_s2 }
  0x26   :  { %p135_p4 = pnand %p133_p3, %p130_p2 }
  0x28   :  { %138 = shalt.err (!%p135_p4)
}
  0x29   :  { %s139_s18 = scalar_lea.vmem %s38_s9, 128  ;;  %p144_p6 = scmp.lt.s32.totalorder %s38_s9, %s38_s9 }
  0x2a   :  { %p140_p5 = scmp.ne.s32.totalorder %s38_s9, %s139_s18  ;;  %p145_p7 = scmp.lt.s32.totalorder %s139_s18, %s139_s18 }
  0x2c   :  { %p146_p8 = por %p145_p7, %p144_p6 }
  0x2e   :  { %p147_p9 = pnand %p146_p8, %p140_p5 }
  0x30   :  { %150 = shalt.err (!%p147_p9)
}
  0x31   :  { %40 = dma.hbm_to_vmem [thread:$0]  %s253_s2, 128, %s38_s9, [#allocation6]  }
  0x32   :  { %173 = dma.done.wait [#allocation3], 32  }
  0x33   :  { %174 = vsyncadd [#allocation3], 4294967264 }
  0x34   :  { %175 = dma.done.wait [#allocation6], 256  }
  0x35   :  { %176 = vsyncadd [#allocation6], 4294967040  ;;  %v52_v0 = vlaneseq  ;;  %v50_v4 = vld [vmem:[#allocation2] sm:$0x3]  ;;  %v51_v5 = vld [vmem:[#allocation5] sm:$0xff]  ;;  %s182_s19 = smov [#allocation8]  }
  0x36   :  { %v57_v6 = vld [vmem:[#allocation7] sm:$0xff]  ;;  %s71_s20 = sshll.u32 %s182_s19, 4  ;;  %s72_s20 = int_to_ptr.vmem [resolvable:$true] %s71_s20 }
  0x37   :  { %v53_v1 = vshrl.u32 %v52_v0, 7  ;;  %s151_s2 = scalar_lea.vmem %s72_s20, 128  ;;  %p156_p11 = scmp.lt.s32.totalorder %s72_s20, %s72_s20 }
  0x38   :  { %p152_p10 = scmp.ne.s32.totalorder %s72_s20, %s151_s2  ;;  %p157_p12 = scmp.lt.s32.totalorder %s151_s2, %s151_s2 }
  0x39   :  { %v54_v2 = vsub.s32 0, %v53_v1  ;;  %v60_v3 = vsub.s32 1, %v53_v1 }
  0x3a   :  { %p158_p13 = por %p157_p12, %p156_p11 }
  0x3b   :  { %v55_v7 = vrot.slane %v50_v4, %v54_v2  ;;  %v61_v8 = vrot.slane %v50_v4, %v60_v3 }
  0x3c   :  { %p159_p0 = pnand %p158_p13, %p152_p10 }
  0x3d   :  { %v56_v9 = vmul.f32 %v55_v7, %v51_v5  ;;  %v62_v10 = vmul.f32 %v61_v8, %v57_v6 }
  0x3f   :  { %v63_v11 = vadd.f32 %v62_v10, %v56_v9 }
  0x41   :  { %64 = vst [vmem:[#allocation8] sm:$0xff] %v63_v11 }
  0x42   :  { %162 = shalt.err (!%p159_p0)
}
  0x43   :  { %s163_s23 = scalar_lea.hbm %s254_s3, 128 }
  0x44   :  { %p164_p1 = scmp.ne.s32.totalorder %s254_s3, %s163_s23  ;;  %p167_p2 = scmp.lt.u32.totalorder %s163_s23, %s254_s3 }
  0x46   :  { %p169_p3 = pnand %p167_p2, %p164_p1 }
  0x48   :  { %172 = shalt.err (!%p169_p3)
}
  0x49   :  { %74 = dma.vmem_to_hbm [thread:$0]  %s72_s20, 128, %s254_s3, [#allocation4]  }
  0x4a   :  { %177 = dma.done.wait [#allocation4], 128  }
  0x4b   :  { %178 = vsyncadd [#allocation4], 4294967168 }
  0x4c   :  { %78 = vsyncpa [#allocation3], 1 }
  0x4d   :  { %79 = vsyncpa [#allocation6], 1 }
  0x4e   :  { %80 = vsyncpa [#allocation4], 1 }

</bundles_post_ra>
